<compile_context>
chip_gen: v7x
topology: tpu7x:2x2x1
jax: 0.10.0
libtpu: 0.0.40
codegen_flags: <defaults>
</compile_context>

<pallas_src>
import functools

import jax
import jax.numpy as jnp
from jax.experimental import pallas as pl
from jax.experimental.pallas import tpu as pltpu


def _stats_kernel(pred_ref, tgt_ref, out_ref, *, spatial_size, needs_mask):
    """Accumulate per-image stats M[i,:] = [A[i,0:C], cnt[i], sum_lse[i]].

    pred_ref: (1, C, TILE)  scores (f32 or bf16)
    tgt_ref : (1, 1, TILE)  integer labels (int8 / int32), already clamped
    out_ref : (1, C, C+2)   f32 accumulator, resident across the spatial axis
    """
    s = pl.program_id(1)
    _, C, tile = pred_ref.shape

    @pl.when(s == 0)
    def _init():
        out_ref[...] = jnp.zeros_like(out_ref)

    pred_t = pred_ref[0]                                       # (C, TILE)
    tgt_t = tgt_ref[0].astype(jnp.int32)                       # (1, TILE)

    # One-hot class mask built once; every statistic reuses it via the MXU.
    cls = jax.lax.broadcasted_iota(jnp.int32, (C, tile), 0)
    mask_b = tgt_t == cls                                      # (C, TILE) bool

    if needs_mask:  # partial last tile: zero lanes past the end of the image
        lane = jax.lax.broadcasted_iota(jnp.int32, (1, tile), 1)
        valid = (s * tile + lane) < spatial_size               # (1, TILE) bool
        mask_b = jnp.logical_and(mask_b, valid)
        pred_t = jnp.where(valid, pred_t, jnp.zeros((), pred_t.dtype))

    # Numerically-stable log-sum-exp over channels (f32 math; exp/log on EUP).
    pred_f = pred_t.astype(jnp.float32)
    m = jnp.max(pred_f, axis=0, keepdims=True)                 # (1, TILE)
    lse = m + jnp.log(jnp.sum(jnp.exp(pred_f - m), axis=0, keepdims=True))

    # TODO(synk): for C < 8 a (C, S//128, 128) layout would fill all vreg
    # sublanes during the softmax/mask work (~2x VPU); kept (C, TILE) since the
    # heavy reductions already ride the (otherwise idle) MXU.

    # Single MXU pass: mask @ [pred ; ones ; lse]^T  ->  (C, C+2).
    # bf16 pred stays bf16 (mask is exact 0/1); pass precision=HIGHEST here if
    # bit-tighter f32 parity is ever required.
    op_dtype = pred_t.dtype
    mask = mask_b.astype(op_dtype)
    rhs = jnp.concatenate(
        [pred_t,
         jnp.ones((1, tile), op_dtype),
         lse.astype(op_dtype)],
        axis=0)                                                # (C+2, TILE)
    stats = jax.lax.dot_general(
        mask, rhs,
        dimension_numbers=(((1,), (1,)), ((), ())),
        preferred_element_type=jnp.float32)                    # (C, C+2)

    out_ref[0] = out_ref[0] + stats


def _choose_spatial_tile(S, C, pred_bytes, tgt_bytes):
    """Pick the spatial tile from a VMEM budget (v7x-aware), not divisibility."""
    # VMEM bytes per spatial lane per grid step: double-buffered pred + target
    # input blocks plus ~6 f32 (C, TILE)-shaped in-kernel temporaries.
    per_lane = 2 * (C * pred_bytes + tgt_bytes) + 6 * C * 4
    budget = 20 * 1024 * 1024          # leaves ample headroom under v7x's 64 MiB
    tile = max(min(budget // per_lane, 1 << 16), 512)
    if S <= tile:
        return S, per_lane             # whole image in one block; no lane masking
    return (tile // 128) * 128, per_lane


def bu_net_loss(pred, target, smooth=1.0, eps=1e-6):
    """BU_Net_Loss forward (weighted cross-entropy + dice) -> scalar."""
    if target.ndim == 4:                              # (N,1,H,W) -> (N,H,W)
        target = target.reshape(target.shape[0], target.shape[2], target.shape[3])

    N, C, H, W = pred.shape
    S = H * W

    if pred.dtype not in (jnp.float32, jnp.bfloat16):
        pred = pred.astype(jnp.float32)               # bf16 kept as-is (half the DMA bytes)
    tgt_dtype = jnp.int8 if C <= 127 else jnp.int32   # shrink target DMA 4x for small C

    pred_flat = pred.reshape(N, C, S)                 # lane-dense last axis
    # Clamp once here (matches target.clamp_(0, C-1) in the module) so the
    # kernel needs no per-tile clip.
    tgt_flat = jnp.clip(target.astype(jnp.int32), 0, C - 1).astype(tgt_dtype)
    tgt_flat = tgt_flat.reshape(N, 1, S)

    pred_bytes = jnp.dtype(pred.dtype).itemsize
    tgt_bytes = jnp.dtype(tgt_dtype).itemsize
    tile, per_lane = _choose_spatial_tile(S, C, pred_bytes, tgt_bytes)
    num_s = pl.cdiv(S, tile)
    needs_mask = (S % tile) != 0

    est_vmem = per_lane * tile + (2 << 20)            # + output blocks / misc headroom
    vmem_limit = int(min(max(2 * est_vmem, 32 << 20), 48 << 20))

    kernel = functools.partial(_stats_kernel, spatial_size=S, needs_mask=needs_mask)

    stats = pl.pallas_call(
        kernel,
        out_shape=jax.ShapeDtypeStruct((N, C, C + 2), jnp.float32),
        grid_spec=pltpu.PrefetchScalarGridSpec(
            num_scalar_prefetch=0,
            grid=(N, num_s),                          # spatial reduction axis last
            in_specs=[
                pl.BlockSpec((1, C, tile), lambda n, s: (n, 0, s)),
                pl.BlockSpec((1, 1, tile), lambda n, s: (n, 0, s)),
            ],
            out_specs=pl.BlockSpec((1, C, C + 2), lambda n, s: (n, 0, 0)),
        ),
        compiler_params=pltpu.CompilerParams(
            # Each image owns its own output block -> batch axis can shard
            # across both v7x TensorCores; spatial axis accumulates in-place.
            dimension_semantics=("parallel", "arbitrary"),
            vmem_limit_bytes=vmem_limit,
        ),
    )(pred_flat, tgt_flat)

    # ---- tiny finalize: fold in the global 1/(class count + eps) weights -------
    A = stats[:, :, :C]                               # (N, class i, channel c)
    cnt = stats[:, :, C]                              # (N, C) per-image class counts
    mlse = stats[:, :, C + 1]                         # (N, C) sum of lse over class-i pixels
    lgp = jnp.diagonal(A, axis1=1, axis2=2) - mlse    # (N, C) sum of log_softmax@target

    inv = 1.0 / (jnp.sum(cnt, axis=0) + eps)          # (C,) exact divide (runs once)
    iv = inv * jnp.arange(C, dtype=jnp.float32)       # i / (count_i + eps)

    wce = -jnp.mean(jnp.sum(lgp * inv, axis=1) / jnp.sum(cnt * inv, axis=1))

    inter = jnp.einsum('nic,i->nc', A, iv)
    union = jnp.einsum('nic,i->nc', A, inv) + jnp.sum(cnt * iv, axis=1, keepdims=True)
    dice = jnp.mean(1.0 - (2.0 * inter + smooth) / (union + smooth))
    return wce + dice


def bu_net_loss_ref(pred, target):
    """Pure-JAX reference mirroring the PyTorch module (for sanity check)."""
    pred = pred.astype(jnp.float32)
    N, C, H, W = pred.shape
    tgt = jnp.clip(target.astype(jnp.int32), 0, C - 1)
    onehot = jax.nn.one_hot(tgt, C, dtype=jnp.float32)            # (N,H,W,C)
    counts = onehot.sum(axis=(0, 1, 2))                           # (C,)
    weights = (onehot * (1.0 / (counts + 1e-6))).sum(-1)          # (N,H,W)
    logp = jax.nn.log_softmax(pred, axis=1)
    logp_t = jnp.take_along_axis(logp, tgt[:, None], axis=1)[:, 0]
    wce = -jnp.mean((logp_t * weights).sum(axis=(1, 2)) / weights.sum(axis=(1, 2)))
    tf = tgt.astype(jnp.float32)[:, None]                         # (N,1,H,W)
    wf = weights[:, None]
    inter = (pred * tf * wf).sum(axis=(2, 3))
    union = (wf * pred).sum(axis=(2, 3)) + (wf * tf).sum(axis=(2, 3))
    dice = jnp.mean(1.0 - (2.0 * inter + 1.0) / (union + 1.0))
    return wce + dice


if __name__ == "__main__":
    key = jax.random.PRNGKey(0)
    kp, kt = jax.random.split(key)
    N, C, H, W = 2, 4, 16, 16
    pred = jax.random.normal(kp, (N, C, H, W), dtype=jnp.float32)
    target = jax.random.randint(kt, (N, H, W), 0, C, dtype=jnp.int32)

    loss = bu_net_loss(pred, target)
    jax.block_until_ready(loss)

    ref = bu_net_loss_ref(pred, target)
    assert jnp.allclose(loss, ref, rtol=1e-3, atol=1e-3), (loss, ref)

    print("KERNEL_OK")
</pallas_src>

<mosaic_0001>
module attributes {stable_mosaic.version = 11 : i64} {
  func.func @_stats_kernel(%arg0: i32, %arg1: i32, %arg2: memref<1x4x256xf32, #tpu.memory_space<vmem>>, %arg3: memref<1x1x256xi8, #tpu.memory_space<vmem>>, %arg4: memref<1x4x6xf32, #tpu.memory_space<vmem>>) attributes {dimension_semantics = [#tpu.dimension_semantics<parallel>, #tpu.dimension_semantics<arbitrary>], iteration_bounds = array<i64: 2, 1>, scalar_prefetch = 0 : i64, scratch_operands = 0 : i64, tpu.core_type = #tpu.core_type<tc>, window_params = [{transform_indices = @transform_0, window_bounds = array<i64: 1, 4, 256>}, {transform_indices = @transform_1, window_bounds = array<i64: 1, 1, 256>}, {transform_indices = @transform_2, window_bounds = array<i64: 1, 4, 6>}]} {
    %c0_i32 = arith.constant 0 : i32
    %0 = arith.cmpi eq, %arg1, %c0_i32 : i32
    %1 = arith.extui %0 : i1 to i32
    %c0_i32_0 = arith.constant 0 : i32
    %2 = arith.cmpi ne, %1, %c0_i32_0 : i32
    scf.if %2 {
      %cst_15 = arith.constant 0.000000e+00 : f32
      %31 = vector.broadcast %cst_15 : f32 to vector<1x4x6xf32>
      %c0_16 = arith.constant 0 : index
      %c0_17 = arith.constant 0 : index
      %c0_18 = arith.constant 0 : index
      %32 = vector.load %arg4[%c0_16, %c0_17, %c0_18] : memref<1x4x6xf32, #tpu.memory_space<vmem>>, vector<1x4x6xf32>
      tpu.vector_store %arg4[%c0_16, %c0_17, %c0_18], %31 {strides = array<i32>} : memref<1x4x6xf32, #tpu.memory_space<vmem>>, vector<1x4x6xf32>,
    } else {
    }
    %c0 = arith.constant 0 : index
    %c0_1 = arith.constant 0 : index
    %c0_2 = arith.constant 0 : index
    %3 = vector.load %arg2[%c0, %c0_1, %c0_2] : memref<1x4x256xf32, #tpu.memory_space<vmem>>, vector<1x4x256xf32>
    %4 = vector.shape_cast %3 : vector<1x4x256xf32> to vector<4x256xf32>
    %c0_3 = arith.constant 0 : index
    %c0_4 = arith.constant 0 : index
    %c0_5 = arith.constant 0 : index
    %5 = vector.load %arg3[%c0_3, %c0_4, %c0_5] : memref<1x1x256xi8, #tpu.memory_space<vmem>>, vector<1x1x256xi8>
    %6 = vector.shape_cast %5 : vector<1x1x256xi8> to vector<1x256xi8>
    %7 = arith.extsi %6 : vector<1x256xi8> to vector<1x256xi32>
    %8 = tpu.iota {dimensions = array<i32: 0>} : vector<4x256xi32>
    %9 = vector.broadcast %7 : vector<1x256xi32> to vector<4x256xi32>
    %10 = arith.cmpi eq, %9, %8 : vector<4x256xi32>
    %cst = arith.constant dense<0xFF800000> : vector<256xf32>
    %11 = vector.multi_reduction <maximumf>, %4, %cst [0] : vector<4x256xf32> to vector<256xf32>
    %12 = vector.shape_cast %11 : vector<256xf32> to vector<1x256xf32>
    %13 = vector.broadcast %12 : vector<1x256xf32> to vector<4x256xf32>
    %14 = arith.subf %4, %13 : vector<4x256xf32>
    %15 = math.exp %14 : vector<4x256xf32>
    %cst_6 = arith.constant dense<0.000000e+00> : vector<256xf32>
    %16 = vector.multi_reduction <add>, %15, %cst_6 [0] : vector<4x256xf32> to vector<256xf32>
    %17 = vector.shape_cast %16 : vector<256xf32> to vector<1x256xf32>
    %18 = math.log %17 : vector<1x256xf32>
    %19 = arith.addf %12, %18 : vector<1x256xf32>
    %20 = arith.extui %10 : vector<4x256xi1> to vector<4x256xi32>
    %21 = arith.sitofp %20 : vector<4x256xi32> to vector<4x256xf32>
    %cst_7 = arith.constant 1.000000e+00 : f32
    %22 = vector.broadcast %cst_7 : f32 to vector<1x256xf32>
    %23 = tpu.concatenate %4, %22, %19 in 0 : vector<4x256xf32>, vector<1x256xf32>, vector<1x256xf32> -> vector<6x256xf32>
    %cst_8 = arith.constant dense<0.000000e+00> : vector<4x6xf32>
    %24 = tpu.matmul %21, %23, %cst_8 {dimension_numbers = #tpu.dot_dimension_numbers<[1], [1], [0], [0], [0, 0, 1, 0], [], []>} : vector<4x256xf32>, vector<6x256xf32>, vector<4x6xf32> -> vector<4x6xf32>
    %c0_9 = arith.constant 0 : index
    %c0_10 = arith.constant 0 : index
    %c0_11 = arith.constant 0 : index
    %25 = vector.load %arg4[%c0_9, %c0_10, %c0_11] : memref<1x4x6xf32, #tpu.memory_space<vmem>>, vector<1x4x6xf32>
    %26 = vector.shape_cast %25 : vector<1x4x6xf32> to vector<4x6xf32>
    %27 = arith.addf %26, %24 : vector<4x6xf32>
    %c0_12 = arith.constant 0 : index
    %c0_13 = arith.constant 0 : index
    %c0_14 = arith.constant 0 : index
    %28 = vector.load %arg4[%c0_12, %c0_13, %c0_14] : memref<1x4x6xf32, #tpu.memory_space<vmem>>, vector<1x4x6xf32>
    %29 = vector.shape_cast %28 : vector<1x4x6xf32> to vector<4x6xf32>
    %30 = vector.shape_cast %27 : vector<4x6xf32> to vector<1x4x6xf32>
    tpu.vector_store %arg4[%c0_12, %c0_13, %c0_14], %30 {strides = array<i32>} : memref<1x4x6xf32, #tpu.memory_space<vmem>>, vector<1x4x6xf32>,
    return
  }
  func.func @transform_0(%arg0: i32, %arg1: i32) -> (i32, i32, i32) {
    %c0_i32 = arith.constant 0 : i32
    %c0_i32_0 = arith.constant 0 : i32
    return %arg0, %c0_i32, %arg1 : i32, i32, i32
  }
  func.func @transform_1(%arg0: i32, %arg1: i32) -> (i32, i32, i32) {
    %c0_i32 = arith.constant 0 : i32
    %c0_i32_0 = arith.constant 0 : i32
    return %arg0, %c0_i32, %arg1 : i32, i32, i32
  }
  func.func @transform_2(%arg0: i32, %arg1: i32) -> (i32, i32, i32) {
    %c0_i32 = arith.constant 0 : i32
    %c0_i32_0 = arith.constant 0 : i32
    %c0_i32_1 = arith.constant 0 : i32
    return %arg0, %c0_i32, %c0_i32_0 : i32, i32, i32
  }
}

</mosaic_0001>

<bundles_post_ra>
// kernel: tpu_custom_call.1
= control target key start
LH: loop header
LB: loop body
LE: loop exit
PB: predicated region body
PF: predicated region fallthrough
CT: control target
= control target key end

     0   :  { %7 = vsyncpa [#allocation3], 0  ;;  %s902_s0 = inlined_call_operand.hbm [shape: f32[2,4,256], index: 0, kind: input, shape index: {}]   ;;  %s903_s1 = inlined_call_operand.vmem [shape: s8[2,1,256], index: 1, kind: input, shape index: {}]   ;;  %s904_s2 = inlined_call_operand.hbm [shape: f32[2,4,6], index: 2, kind: output, shape index: {}]  }
   0x1   :  { %9 = vsyncpa [#allocation3 + $0x1], 0 }
   0x2   :  { %10 = vsyncpa [#allocation4], 0 }
   0x3   :  { %12 = vsyncpa [#allocation4 + $0x1], 0  ;;  %s704_s9 = smov 0   ;;  %s706_s10 = smov 0  }
   0x4   :  { %s708_s11 = smov 0   ;;  %s710_s12 = smov 0  }
   0x5   :  { %s712_s13 = smov 0   ;;  %s714_s14 = smov 0  }
   0x6 LB: > { %s480_s15 = sadd.s32 4294967295, %s683_s14   ;;  %s481_s16 = sadd.s32 4294967294, %s683_s14   ;;  %s683_s14 = sphi %s714_s14, %s18_s14   ;;  %s679_s13 = sphi %s712_s13, %s920_s13   ;;  %s675_s12 = sphi %s710_s12, %s919_s12   ;;  %s671_s11 = sphi %s708_s11, %s918_s11   ;;  %s667_s10 = sphi %s706_s10, %s917_s10   ;;  %s663_s9 = sphi %s704_s9, %s916_s9  }
   0x7   : > { %s30_s17 = sadd.s32 1, %s679_s13  ;;  %s39_s18 = sadd.s32 1, %s671_s11 }
   0x8   : > { %p32_p0 = scmp.ge.s32.totalorder %s30_s17, 2  ;;  %p46_p1 = scmp.ne.s32.totalorder %s671_s11, %s667_s10 }
   0x9   : > { %p47_p2 = scmp.eq.s32.totalorder %s683_s14, 0  ;;  %p52_p3 = scmp.ne.s32.totalorder %s667_s10, %s663_s9 }
   0xa   : > { %s922_s17 = smov (%p32_p0, %s30_s17), 0  ;;  %p53_p5 = scmp.eq.s32.totalorder %s480_s15, 0 }
   0xb   : > { %p745_p4 = por %p47_p2, %p46_p1  ;;  %s34_s20 = ssub.s32 %s679_s13, %s922_s17 }
   0xc   : > { %p104_p6 = scmp.eq.s32.totalorder %s480_s15, 1  ;;  %p37_p7 = scmp.eq.s32.totalorder %s34_s20, 0 }
   0xd   : > { %p751_p8 = por %p53_p5, %p52_p3  ;;  %p110_p10 = scmp.eq.s32.totalorder %s481_s16, 1 }
   0xe   : > { %p755_p9 = por %p104_p6, %p46_p1  ;;  %p512_p13 = scmp.lt.s32.totalorder %s683_s14, 2 }
   0xf   : > { %s760_s23 = scalar_select %p37_p7, %s671_s11, %s39_s18  }
  0x10   : > { %s908_s22 = scalar_select %p755_p9, 1, 0 }
  0x11   : > { %p762_p11 = por %p110_p10, %p52_p3  ;;  %s130_s25 = sand.u32 1, %s671_s11  }
  0x12   : > { %s484_s26 = sshll.u32 %s130_s25, 3  ;;  %s499_s27 = sshll.u32 %s679_s13, 7 }
  0x13   : > { %s909_s24 = scalar_select %p762_p11, 1, 0 }
  0x14   : > { %s773_s30 = scalar_lea.hbm %s902_s0, %s499_s27  ;;  %s134_s3 = scalar_lea.vmem [#allocation2], %s484_s26 }
  0x15   : > { %s144_s4 = sshll.u32 %s134_s3, 4  ;;  %p779_p0 = pnand %p512_p13, %p745_p4  ;;  %s775_s4 = int_to_ptr.vmem [resolvable:$true] %s144_s4 }
  0x16   : > { %s131_s6 = scalar_lea.sflag [#allocation3], %s130_s25  ;;  %s571_s7 = scalar_lea.hbm %s773_s30, 128 }
  0x17   : > { %p572_p3 = scmp.ne.s32.totalorder %s773_s30, %s571_s7  ;;  %p573_p5 = pneg %p779_p0 }
  0x18   : > { %s576_s16 = scalar_lea.hbm %s902_s0, 256  ;;  %p577_p4 = scmp.lt.u32.totalorder %s773_s30, %s902_s0 }
  0x19   : > { %p574_p6 = pnand %p573_p5, %p572_p3  ;;  %p578_p10 = scmp.lt.u32.totalorder %s576_s16, %s571_s7 }
  0x1a   : > { %p580_p12 = scmp.lt.u32.totalorder %s571_s7, %s773_s30 }
  0x1b   : > { %p575_p7 = pneg %p574_p6  ;;  %p579_p13 = por %p578_p10, %p577_p4 }
  0x1d   : > { %p581_p1 = por %p580_p12, %p579_p13 }
  0x1f   : > { %p582_p2 = pnand %p581_p1, %p575_p7 }
  0x21   : > { %585 = shalt.err (!%p582_p2)
}
  0x22   : > { %s586_s20 = scalar_lea.vmem %s775_s4, 128  ;;  %s685_s25 = smov [#allocation2]  }
  0x23   : > { %p587_p3 = scmp.ne.s32.totalorder %s775_s4, %s586_s20  ;;  %s591_s26 = sshll.u32 %s685_s25, 4  ;;  %s592_s26 = int_to_ptr.vmem [resolvable:$false] %s591_s26 }
  0x24   : > { %s593_s27 = scalar_lea.vmem %s592_s26, 256  ;;  %p594_p9 = scmp.lt.s32.totalorder %s775_s4, %s592_s26 }
  0x25   : > { %p589_p6 = pnand %p587_p3, %p573_p5  ;;  %p595_p4 = scmp.lt.s32.totalorder %s593_s27, %s586_s20 }
  0x27   : > { %p590_p11 = pneg %p589_p6  ;;  %p596_p10 = por %p595_p4, %p594_p9 }
  0x29   : > { %p597_p12 = pnand %p596_p10, %p590_p11 }
  0x2b   : > { %600 = shalt.err (!%p597_p12)
}
  0x2c   : > { %507 = dma.hbm_to_vmem [thread:$0]  (!%p779_p0), %s773_s30, 128, %s775_s4, %s131_s6  }
  0x2d   : > { %p911_p1 = scmp.lt.s32.totalorder %s683_s14, 3  ;;  %p912_p2 = scmp.ge.s32.totalorder %s683_s14, 1 }
  0x2f   : > { %p162_p5 = pnand %p912_p2, %p911_p1 }
  0x30   : > { %s815_s28 = sand.u32 (!%p162_p5), 1, %s667_s10  }
  0x31   : > { %165 = sbr.rel (%p162_p5) target bundleno = 354 (0x162), region = 28  ;;  %s488_s29 = sshll.u32 (!%p162_p5), %s815_s28, 3 }
  0x32   : > { %s168_s3 = scalar_lea.sflag (!%p162_p5), [#allocation3], %s815_s28  ;;  %s171_s7 = scalar_lea.vmem (!%p162_p5), [#allocation2], %s488_s29 }
  0x38   : > { %654 = dma.done.wait (%p751_p8), %s168_s3, 128  }
  0x39   : > { %656 = vsyncadd (%p751_p8), %s168_s3, 4294967168  ;;  %p202_p9 = scmp.lt.s32.totalorder %s675_s12, 1  ;;  %v219_v0 = vlaneseq  ;;  %s489_s30 = sshll.u32 %s815_s28, 2  ;;  %vm214_vm0 = vcmask 44032   ;;  %v686_v2 = vmov 0.0   ;;  %vm242_vm1 = vcmask 1043456  }
  0x3a   : > { %s828_s5 = scalar_lea.vmem [#allocation5], %s489_s30  ;;  %v216_v4 = vld [vmem:[%s171_s7] sm:$0xff]  ;;  %v687_v20 = vmov 1.0   ;;  %vm293_vm3 = vcmask 1044480   ;;  %s496_s16 = sshll.u32 %s675_s12, 6 }
  0x3b   : > { %s203_s4 = scalar_select %p202_p9, %s675_s12, 1  ;;  %v826_v1 = vshrl.u32 %v219_v0, 7  ;;  %215 = vst.msk [vmem:[%s828_s5] sm:$0xf] %vm214_vm0, %v686_v2  ;;  %v240_v6 = vcombine.high %v216_v4, %v216_v4  ;;  %v243_v7 = vsel %vm242_vm1, %v216_v4, -inf  ;;  %v291_v51 = vsel %vm242_vm1, %v216_v4, 1.0 }
  0x3c   : > { %v244_v10 = vrot.slane %v243_v7, 4  ;;  %s384_s18 = sshll.u32 %s828_s5, 4  ;;  %s851_s25 = scalar_lea.hbm %s904_s2, %s496_s16  ;;  %s853_s18 = int_to_ptr.vmem [resolvable:$true] %s384_s18 }
  0x3d   : > { %s490_s6 = sshll.u32 %s203_s4, 1  ;;  %v227_v3 = vsub.s32 4, %v826_v1  ;;  %v223_v9 = vsub.s32 0, %v826_v1  ;;  %v250_v11 = vsel %vm242_vm1, %v240_v6, -inf  ;;  %v292_v52 = vsel %vm242_vm1, %v240_v6, 1.0  ;;  %s371_s26 = scalar_lea.sflag [#allocation4], %s815_s28 }
  0x3e   : > { %s208_s15 = scalar_lea.vmem %s903_s1, %s490_s6  ;;  %v245_v13 = vmax.f32 %v243_v7, %v244_v10  ;;  %v251_v14 = vrot.slane %v250_v11, 4  ;;  %s601_s27 = scalar_lea.vmem %s853_s18, 64 }
  0x3f   : > { %v217_v5 = vld [vmem:[%s208_s15] sm:$0x3]  ;;  %p602_p8 = scmp.ne.s32.totalorder %s853_s18, %s601_s27  ;;  %p913_p11 = scmp.ne.s32.totalorder %s908_s22, 0 }
  0x40   : > { %v218_v8 = vunpack.c.0.s8 %v217_v5  ;;  %v246_v16 = vrot.slane %v245_v13, 2  ;;  %v252_v17 = vmax.f32 %v250_v11, %v251_v14  ;;  %s688_s12 = smov [#allocation5]  }
  0x41   : > { %p603_p0 = pnand %p602_p8, %p913_p11  ;;  %s605_s29 = sshll.u32 %s688_s12, 4  ;;  %s606_s29 = int_to_ptr.vmem [resolvable:$false] %s605_s29 }
  0x42   : > { %v228_v12 = vrot.slane %v218_v8, %v227_v3  ;;  %v247_v18 = vmax.f32 %v245_v13, %v246_v16  ;;  %v253_v19 = vrot.slane %v252_v17, 2  ;;  %v224_v47 = vrot.slane %v218_v8, %v223_v9  ;;  %v366_v57 = vld [vmem:[%s828_s5] sm:$0xf]  ;;  %s607_s3 = scalar_lea.vmem %s606_s29, 128  ;;  %p608_p13 = scmp.lt.s32.totalorder %s853_s18, %s606_s29 }
  0x43   : > { %p604_p7 = pneg %p603_p0  ;;  %p609_p3 = scmp.lt.s32.totalorder %s607_s3, %s601_s27 }
  0x44   : > { %v236_v15 = vrot.slane %v228_v12, %v223_v9  ;;  %v248_v21 = vrot.slane %v247_v18, 1  ;;  %v254_v22 = vmax.f32 %v252_v17, %v253_v19  ;;  %v232_v54 = vrot.slane %v224_v47, %v223_v9 }
  0x45   : > { %p610_p6 = por %p609_p3, %p608_p13 }
  0x46   : > { %vm238_vm2 = vcmp.eq.s32.totalorder %v236_v15, %v826_v1  ;;  %v249_v23 = vmax.f32 %v247_v18, %v248_v21  ;;  %v255_v24 = vrot.slane %v254_v22, 1  ;;  %vm237_vm4 = vcmp.eq.s32.totalorder %v232_v54, %v826_v1 }
  0x47   : > { %493 = vmatprep.mubr.msk.f32.mxu0 %vm238_vm2, %v687_v20  ;;  %p611_p4 = pnand %p610_p6, %p604_p7 }
  0x48   : > { %v256_v25 = vmax.f32 %v254_v22, %v255_v24 }
  0x4a   : > { %v259_v26 = vcombine.low %v249_v23, %v256_v25 }
  0x4c   : > { %v261_v27 = vsub.f32 %v216_v4, %v259_v26 }
  0x4e   : > { %v262_v28 = vmul.f32 1.442695, %v261_v27 }
  0x50   : > { %565 = vpow2.f32 %v262_v28 }
  0x5a   : > { %v566_v29 = vpop.eup %565 }
  0x5b   : > { %v265_v30 = vcombine.high %v566_v29, %v566_v29  ;;  %v267_v31 = vsel %vm242_vm1, %v566_v29, 0.0 }
  0x5c   : > { %v268_v32 = vrot.slane %v267_v31, 4 }
  0x5d   : > { %v274_v33 = vsel %vm242_vm1, %v265_v30, 0.0 }
  0x5e   : > { %v275_v34 = vrot.slane %v274_v33, 4  ;;  %v269_v35 = vadd.f32 %v268_v32, %v267_v31 }
  0x60   : > { %v276_v36 = vadd.f32 %v275_v34, %v274_v33  ;;  %v270_v37 = vrot.slane %v269_v35, 2 }
  0x62   : > { %v277_v38 = vrot.slane %v276_v36, 2  ;;  %v271_v39 = vadd.f32 %v270_v37, %v269_v35 }
  0x64   : > { %v278_v40 = vadd.f32 %v277_v38, %v276_v36  ;;  %v272_v41 = vrot.slane %v271_v39, 1 }
  0x66   : > { %v279_v42 = vrot.slane %v278_v40, 1  ;;  %v273_v43 = vadd.f32 %v272_v41, %v271_v39 }
  0x68   : > { %v280_v44 = vadd.f32 %v279_v42, %v278_v40  ;;  %567 = vlog2.f32 %v273_v43 }
  0x6a   : > { %569 = vlog2.f32 %v280_v44 }
  0x72   : > { %v568_v45 = vpop.eup %567 }
  0x73   : > { %v282_v46 = vmul.f32 0.6931472, %v568_v45 }
  0x74   : > { %v570_v48 = vpop.eup %569 }
  0x75   : > { %v284_v49 = vmul.f32 0.6931472, %v570_v48  ;;  %v285_v50 = vadd.f32 %v282_v46, %v249_v23 }
  0x77   : > { %v286_v53 = vadd.f32 %v284_v49, %v256_v25  ;;  %v294_v55 = vsel %vm293_vm3, %v291_v51, %v285_v50 }
  0x79   : > { %v295_v56 = vsel %vm293_vm3, %v292_v52, %v286_v53 }
  0x7a   : > { %296 = vmatprep.subr.mxu0 %v295_v56 }
  0x7b   : > { %297 = vmatpush1.xpose.msra.mxu0 %v294_v55 }
  0x7e   : > { %494 = vmatmul.mubr.msk.f32.vlgmr.msra.gmra.mrb[0].mxu0 %vm237_vm4, %v687_v20 }
 0x151   : > { %v362_v58 = vpop.f32.mrb[0].mxu0 }
 0x152   : > { %v367_v59 = vadd.f32 %v366_v57, %v362_v58  ;;  %v364_v60 = vpop.f32.mrb[1].mxu0 }
 0x154   : > { %369 = vst.msk [vmem:[%s828_s5] sm:$0xf] %vm214_vm0, %v367_v59 }
 0x155   : > { %614 = shalt.err (!%p611_p4)
}
 0x156   : > { %s615_s28 = scalar_lea.hbm %s851_s25, 64  ;;  %s619_s4 = scalar_lea.hbm %s904_s2, 128 }
 0x157   : > { %p616_p10 = scmp.ne.s32.totalorder %s851_s25, %s615_s28  ;;  %p620_p2 = scmp.lt.u32.totalorder %s851_s25, %s904_s2 }
 0x158   : > { %p621_p5 = scmp.lt.u32.totalorder %s619_s4, %s615_s28  ;;  %p623_p8 = scmp.lt.u32.totalorder %s615_s28, %s851_s25 }
 0x159   : > { %p617_p12 = pnand %p616_p10, %p913_p11 }
 0x15a   : > { %p622_p9 = por %p621_p5, %p620_p2 }
 0x15b   : > { %p618_p1 = pneg %p617_p12 }
 0x15c   : > { %p624_p0 = por %p623_p8, %p622_p9 }
 0x15e   : > { %p625_p7 = pnand %p624_p0, %p618_p1 }
 0x160   : > { %628 = shalt.err (!%p625_p7)
}
 0x161   : > { %502 = dma.vmem_to_hbm [thread:$0]  (%p913_p11), %s853_s18, 64, %s851_s25, %s371_s26  }
 0x162 PF: > { %s396_s21 = sand.u32 1, %s663_s9   ;;  %p914_p13 = scmp.ne.s32.totalorder %s909_s24, 0 }
 0x163   : > { %p915_p3 = scmp.ge.s32.totalorder %s683_s14, 2  ;;  %s397_s8 = scalar_lea.sflag [#allocation4], %s396_s21 }
 0x165   : > { %p509_p6 = pnand %p915_p3, %p914_p13 }
 0x167   : > { %658 = dma.done.wait (!%p509_p6), %s397_s8, 64  }
 0x168   : > { %660 = vsyncadd (!%p509_p6), %s397_s8, 4294967232  ;;  %s18_s14 = sadd.s32 1, %s683_s14   ;;  %s916_s9 = smov %s667_s10 }
 0x169   : > { %p15_p4 = scmp.ge.s32.totalorder %s18_s14, 4   ;;  %s917_s10 = smov %s671_s11 }
 0x16a   : > { %s918_s11 = smov %s760_s23  ;;  %s919_s12 = smov %s679_s13 }
 0x16b   : > { %s920_s13 = smov %s922_s17  ;;  %17 = sbr.rel (!%p15_p4) target bundleno = 6 (0x6), region = 80 }
 0x172   :  { %402 = vsyncpa [#allocation3], 1 }
 0x173   :  { %404 = vsyncpa [#allocation3 + $0x1], 1 }
 0x174   :  { %405 = vsyncpa [#allocation4], 1 }
 0x175   :  { %407 = vsyncpa [#allocation4 + $0x1], 1 }

</bundles_post_ra>
